<compile_context>
chip_gen: v7x
topology: tpu7x:2x2x1
jax: 0.10.0
libtpu: 0.0.40
codegen_flags: <defaults>
</compile_context>

<pallas_src>
import jax
import jax.numpy as jnp
from jax.experimental import pallas as pl
from jax.experimental.pallas import tpu as pltpu


def _make_alpha_loss_kernel(B, TB, P, num_tiles):
    """Fused-reduction kernel over a flat (num_tiles,) parallel grid."""
    needs_mask = (num_tiles * TB) != B

    def kernel(vals_ref, pp_ref, spp_ref, out_ref):
        i = pl.program_id(0)

        # Value term: (2, TB) lane-dense, rows = [predicted, self_play].
        vals = vals_ref[...].astype(jnp.float32)
        value_sq = (vals[1:2, :] - vals[0:1, :]) ** 2            # (1, TB)

        # Policy cross-entropy term (EUP log, f32 accumulation).
        pp = pp_ref[...].astype(jnp.float32)                     # (TB, P)
        spp = spp_ref[...].astype(jnp.float32)                   # (TB, P)
        policy_terms = -spp * jnp.log(1e-8 + pp)                 # (TB, P)
        row_sums = jnp.sum(policy_terms, axis=1, keepdims=True)  # (TB, 1)

        def _unmasked():
            out_ref[...] = (jnp.sum(row_sums, keepdims=True)
                            + jnp.sum(value_sq, keepdims=True))

        if not needs_mask:
            _unmasked()
        else:
            # Interior tiles: fast, unmasked path.
            @pl.when(i != num_tiles - 1)
            def _():
                _unmasked()

            # Tail tile only: mask AFTER the per-row reduce (select, so any
            # NaN/Inf produced by log() of garbage tail rows is discarded).
            @pl.when(i == num_tiles - 1)
            def _():
                base = i * TB
                row_ids = base + jax.lax.broadcasted_iota(jnp.int32, (TB, 1), 0)
                lane_ids = base + jax.lax.broadcasted_iota(jnp.int32, (1, TB), 1)
                rs = jnp.where(row_ids < B, row_sums, 0.0)
                vs = jnp.where(lane_ids < B, value_sq, 0.0)
                out_ref[...] = (jnp.sum(rs, keepdims=True)
                                + jnp.sum(vs, keepdims=True))

    return kernel


def alpha_loss(predicted_value, self_play_value, predicted_policy,
               self_play_policy, *, max_rows_per_tile=None):
    """Pallas TPU implementation of AlphaLoss.forward.

    predicted_value  : (B,)
    self_play_value  : (B, 1)   (or (B,))
    predicted_policy : (B, P)    (f32 or bf16)
    self_play_policy : (B, P)    (f32 or bf16)
    returns scalar float32
    """
    B = predicted_value.shape[0]
    P = predicted_policy.shape[1]

    # Stack the two value vectors lane-dense: (2, B), rows = [pred, self_play].
    vals = jnp.concatenate(
        [predicted_value.reshape(1, B), self_play_value.reshape(1, B)], axis=0)
    pp = predicted_policy
    spp = self_play_policy

    # ---- tile sizing: <=4 MiB policy tiles per input per buffer, so the
    #      double-buffered footprint (~4-5x tile) fits every generation's
    #      scoped VMEM, including v7x's 64 MiB physical. ----
    itemsize = pp.dtype.itemsize
    tile_bytes = 4 * 1024 * 1024
    rows_per_tile = max(128, (tile_bytes // max(1, P * itemsize)) // 128 * 128)
    if max_rows_per_tile is not None:
        rows_per_tile = max(128, (max_rows_per_tile // 128) * 128)

    if B <= rows_per_tile:
        TB = B                 # single full-extent tile (always layout-legal)
        num_tiles = 1
    else:
        TB = rows_per_tile     # multiple of 128 -> legal for all block dims
        num_tiles = pl.cdiv(B, TB)

    policy_tile_bytes = TB * P * itemsize
    # 2 policy inputs x 2 buffers, plus values / output / headroom.
    vmem_limit = int(min(48 << 20, max(16 << 20, 5 * policy_tile_bytes + (2 << 20))))

    kernel = _make_alpha_loss_kernel(B, TB, P, num_tiles)

    cost = pl.CostEstimate(
        flops=4 * B * P + 3 * B,
        transcendentals=B * P,
        bytes_accessed=2 * B * P * itemsize + 2 * B * vals.dtype.itemsize
                       + num_tiles * 4,
    )

    partials = pl.pallas_call(
        kernel,
        out_shape=jax.ShapeDtypeStruct((num_tiles, 1), jnp.float32),
        grid=(num_tiles,),
        in_specs=[
            pl.BlockSpec((2, TB), lambda i: (0, i)),
            pl.BlockSpec((TB, P), lambda i: (i, 0)),
            pl.BlockSpec((TB, P), lambda i: (i, 0)),
        ],
        out_specs=pl.BlockSpec((1, 1), lambda i: (i, 0)),
        compiler_params=pltpu.CompilerParams(
            dimension_semantics=("parallel",),
            vmem_limit_bytes=vmem_limit,
        ),
        cost_estimate=cost,
    )(vals, pp, spp)

    # Combine per-tile partial sums and take the batch mean.
    return jnp.sum(partials) / jnp.float32(B)


def alpha_loss_ref(predicted_value, self_play_value, predicted_policy, self_play_policy):
    """Pure-JAX reference matching the PyTorch forward exactly."""
    value_error = (jnp.squeeze(self_play_value, -1) - predicted_value) ** 2
    policy_error = jnp.sum(-self_play_policy * jnp.log(1e-8 + predicted_policy), axis=1)
    return jnp.mean(value_error + policy_error)


def _make_inputs(key, B, P):
    k1, k2, k3, k4 = jax.random.split(key, 4)
    predicted_value = jax.random.uniform(k1, (B,), jnp.float32, -1.0, 1.0)
    self_play_value = jax.random.uniform(k2, (B, 1), jnp.float32, -1.0, 1.0)
    predicted_policy = jax.nn.softmax(jax.random.normal(k3, (B, P), jnp.float32), axis=-1)
    self_play_policy = jax.nn.softmax(jax.random.normal(k4, (B, P), jnp.float32), axis=-1)
    return predicted_value, self_play_value, predicted_policy, self_play_policy


if __name__ == "__main__":
    key = jax.random.PRNGKey(0)
    k_small, k_big = jax.random.split(key, 2)

    # Small shapes consistent with the module (single full-extent tile).
    B, P = 8, 32
    pv, spv, pp, spp = _make_inputs(k_small, B, P)
    loss = alpha_loss(pv, spv, pp, spp)
    jax.block_until_ready(loss)
    ref = alpha_loss_ref(pv, spv, pp, spp)
    assert jnp.allclose(loss, ref, rtol=1e-5, atol=1e-5), (loss, ref)

    # Exercise the flat tiled grid + tail-mask path with a ragged batch.
    B2, P2 = 300, 256
    pv2, spv2, pp2, spp2 = _make_inputs(k_big, B2, P2)
    loss2 = alpha_loss(pv2, spv2, pp2, spp2, max_rows_per_tile=128)
    jax.block_until_ready(loss2)
    ref2 = alpha_loss_ref(pv2, spv2, pp2, spp2)
    assert jnp.allclose(loss2, ref2, rtol=1e-4, atol=1e-5), (loss2, ref2)

    print("KERNEL_OK")
</pallas_src>

<mosaic_0001>
module attributes {stable_mosaic.version = 11 : i64} {
  func.func @kernel(%arg0: i32, %arg1: memref<2x8xf32, #tpu.memory_space<vmem>>, %arg2: memref<8x32xf32, #tpu.memory_space<vmem>>, %arg3: memref<8x32xf32, #tpu.memory_space<vmem>>, %arg4: memref<1x1xf32, #tpu.memory_space<vmem>>) attributes {dimension_semantics = [#tpu.dimension_semantics<parallel>], iteration_bounds = array<i64: 1>, scalar_prefetch = 0 : i64, scratch_operands = 0 : i64, tpu.core_type = #tpu.core_type<tc>, window_params = [{transform_indices = @transform_0, window_bounds = array<i64: 2, 8>}, {transform_indices = @transform_1, window_bounds = array<i64: 8, 32>}, {transform_indices = @transform_2, window_bounds = array<i64: 8, 32>}, {transform_indices = @transform_3, window_bounds = array<i64: 1, 1>}]} {
    %c0 = arith.constant 0 : index
    %c0_0 = arith.constant 0 : index
    %0 = vector.load %arg1[%c0, %c0_0] : memref<2x8xf32, #tpu.memory_space<vmem>>, vector<2x8xf32>
    %1 = vector.extract_strided_slice %0 {offsets = [1, 0], sizes = [1, 8], strides = [1, 1]} : vector<2x8xf32> to vector<1x8xf32>
    %2 = vector.extract_strided_slice %0 {offsets = [0, 0], sizes = [1, 8], strides = [1, 1]} : vector<2x8xf32> to vector<1x8xf32>
    %3 = arith.subf %1, %2 : vector<1x8xf32>
    %4 = arith.mulf %3, %3 : vector<1x8xf32>
    %c0_1 = arith.constant 0 : index
    %c0_2 = arith.constant 0 : index
    %5 = vector.load %arg2[%c0_1, %c0_2] : memref<8x32xf32, #tpu.memory_space<vmem>>, vector<8x32xf32>
    %c0_3 = arith.constant 0 : index
    %c0_4 = arith.constant 0 : index
    %6 = vector.load %arg3[%c0_3, %c0_4] : memref<8x32xf32, #tpu.memory_space<vmem>>, vector<8x32xf32>
    %cst = arith.constant 0.000000e+00 : f32
    %7 = vector.broadcast %cst : f32 to vector<8x32xf32>
    %8 = arith.subf %7, %6 : vector<8x32xf32>
    %cst_5 = arith.constant 9.99999993E-9 : f32
    %9 = vector.broadcast %cst_5 : f32 to vector<8x32xf32>
    %10 = arith.addf %9, %5 : vector<8x32xf32>
    %11 = math.log %10 : vector<8x32xf32>
    %12 = arith.mulf %8, %11 : vector<8x32xf32>
    %cst_6 = arith.constant dense<0.000000e+00> : vector<8xf32>
    %13 = vector.multi_reduction <add>, %12, %cst_6 [1] : vector<8x32xf32> to vector<8xf32>
    %14 = vector.shape_cast %13 : vector<8xf32> to vector<8x1xf32>
    %15 = vector.shape_cast %14 : vector<8x1xf32> to vector<1x8x1xf32>
    %cst_7 = arith.constant dense<0.000000e+00> : vector<1xf32>
    %16 = vector.multi_reduction <add>, %15, %cst_7 [1, 2] : vector<1x8x1xf32> to vector<1xf32>
    %17 = vector.shape_cast %16 : vector<1xf32> to vector<1x1x1xf32>
    %18 = vector.extract %17[0, 0, 0] : f32 from vector<1x1x1xf32>
    %19 = vector.broadcast %18 : f32 to vector<1x1xf32>
    %20 = vector.shape_cast %4 : vector<1x8xf32> to vector<1x1x8xf32>
    %cst_8 = arith.constant dense<0.000000e+00> : vector<1xf32>
    %21 = vector.multi_reduction <add>, %20, %cst_8 [1, 2] : vector<1x1x8xf32> to vector<1xf32>
    %22 = vector.shape_cast %21 : vector<1xf32> to vector<1x1x1xf32>
    %23 = vector.extract %22[0, 0, 0] : f32 from vector<1x1x1xf32>
    %24 = vector.broadcast %23 : f32 to vector<1x1xf32>
    %25 = arith.addf %19, %24 : vector<1x1xf32>
    %c0_9 = arith.constant 0 : index
    %c0_10 = arith.constant 0 : index
    %26 = vector.load %arg4[%c0_9, %c0_10] : memref<1x1xf32, #tpu.memory_space<vmem>>, vector<1x1xf32>
    tpu.vector_store %arg4[%c0_9, %c0_10], %25 {strides = array<i32>} : memref<1x1xf32, #tpu.memory_space<vmem>>, vector<1x1xf32>,
    return
  }
  func.func @transform_0(%arg0: i32) -> (i32, i32) {
    %c0_i32 = arith.constant 0 : i32
    %c0_i32_0 = arith.constant 0 : i32
    return %c0_i32, %arg0 : i32, i32
  }
  func.func @transform_1(%arg0: i32) -> (i32, i32) {
    %c0_i32 = arith.constant 0 : i32
    %c0_i32_0 = arith.constant 0 : i32
    return %arg0, %c0_i32 : i32, i32
  }
  func.func @transform_2(%arg0: i32) -> (i32, i32) {
    %c0_i32 = arith.constant 0 : i32
    %c0_i32_0 = arith.constant 0 : i32
    return %arg0, %c0_i32 : i32, i32
  }
  func.func @transform_3(%arg0: i32) -> (i32, i32) {
    %c0_i32 = arith.constant 0 : i32
    %c0_i32_0 = arith.constant 0 : i32
    return %arg0, %c0_i32 : i32, i32
  }
}

</mosaic_0001>

<bundles_post_ra>
// kernel: tpu_custom_call.1
= control target key start
LH: loop header
LB: loop body
LE: loop exit
PB: predicated region body
PF: predicated region fallthrough
CT: control target
= control target key end

     0   :  { %8 = vsyncpa [#allocation3], 0  ;;  %s289_s0 = inlined_call_operand.hbm [shape: f32[2,8], index: 0, kind: input, shape index: {}]   ;;  %s290_s1 = inlined_call_operand.hbm [shape: f32[8,32], index: 1, kind: input, shape index: {}]   ;;  %s291_s2 = inlined_call_operand.hbm [shape: f32[8,32], index: 2, kind: input, shape index: {}]   ;;  %s292_s3 = inlined_call_operand.hbm [shape: f32[1,1], index: 3, kind: output, shape index: {}]  }
   0x1   :  { %9 = vsyncpa [#allocation6], 0 }
   0x2   :  { %10 = vsyncpa [#allocation4], 0  ;;  %s217_s12 = smov [#allocation5]   ;;  %s218_s14 = smov [#allocation2]  }
   0x3   :  { %s27_s13 = sshll.u32 %s217_s12, 4  ;;  %s17_s15 = sshll.u32 %s218_s14, 4  ;;  %s28_s13 = int_to_ptr.vmem [resolvable:$true] %s27_s13  ;;  %s18_s15 = int_to_ptr.vmem [resolvable:$true] %s17_s15 }
   0x4   :  { %s123_s18 = scalar_lea.hbm %s290_s1, 128 }
   0x5   :  { %p124_p0 = scmp.ne.s32.totalorder %s290_s1, %s123_s18  ;;  %p127_p1 = scmp.lt.u32.totalorder %s123_s18, %s290_s1 }
   0x7   :  { %p129_p2 = pnand %p127_p1, %p124_p0 }
   0x9   :  { %132 = shalt.err (!%p129_p2)
}
   0xa   :  { %s133_s23 = scalar_lea.vmem %s28_s13, 128  ;;  %p138_p4 = scmp.lt.s32.totalorder %s28_s13, %s28_s13 }
   0xb   :  { %p134_p3 = scmp.ne.s32.totalorder %s28_s13, %s133_s23  ;;  %p139_p5 = scmp.lt.s32.totalorder %s133_s23, %s133_s23 }
   0xd   :  { %p140_p6 = por %p139_p5, %p138_p4 }
   0xf   :  { %p141_p7 = pnand %p140_p6, %p134_p3 }
  0x11   :  { %144 = shalt.err (!%p141_p7)
}
  0x12   :  { %30 = dma.hbm_to_vmem [thread:$0]  %s290_s1, 128, %s28_s13, [#allocation6]  }
  0x13   :  { %s145_s28 = scalar_lea.hbm %s289_s0, 32 }
  0x14   :  { %p146_p8 = scmp.ne.s32.totalorder %s289_s0, %s145_s28  ;;  %p149_p9 = scmp.lt.u32.totalorder %s145_s28, %s289_s0 }
  0x16   :  { %p151_p10 = pnand %p149_p9, %p146_p8 }
  0x18   :  { %154 = shalt.err (!%p151_p10)
}
  0x19   :  { %s155_s6 = scalar_lea.vmem %s18_s15, 32  ;;  %p160_p12 = scmp.lt.s32.totalorder %s18_s15, %s18_s15 }
  0x1a   :  { %p156_p11 = scmp.ne.s32.totalorder %s18_s15, %s155_s6  ;;  %p161_p13 = scmp.lt.s32.totalorder %s155_s6, %s155_s6 }
  0x1c   :  { %p162_p0 = por %p161_p13, %p160_p12 }
  0x1e   :  { %p163_p1 = pnand %p162_p0, %p156_p11 }
  0x20   :  { %166 = shalt.err (!%p163_p1)
}
  0x21   :  { %20 = dma.hbm_to_vmem [thread:$0]  %s289_s0, 32, %s18_s15, [#allocation3]  }
  0x22   :  { %s219_s8 = smov [#allocation7]   ;;  %s167_s12 = scalar_lea.hbm %s291_s2, 128 }
  0x23   :  { %s37_s9 = sshll.u32 %s219_s8, 4  ;;  %p168_p2 = scmp.ne.s32.totalorder %s291_s2, %s167_s12  ;;  %s38_s9 = int_to_ptr.vmem [resolvable:$true] %s37_s9 }
  0x24   :  { %p171_p3 = scmp.lt.u32.totalorder %s167_s12, %s291_s2 }
  0x26   :  { %p173_p4 = pnand %p171_p3, %p168_p2 }
  0x28   :  { %176 = shalt.err (!%p173_p4)
}
  0x29   :  { %s177_s18 = scalar_lea.vmem %s38_s9, 128  ;;  %p182_p6 = scmp.lt.s32.totalorder %s38_s9, %s38_s9 }
  0x2a   :  { %p178_p5 = scmp.ne.s32.totalorder %s38_s9, %s177_s18  ;;  %p183_p7 = scmp.lt.s32.totalorder %s177_s18, %s177_s18 }
  0x2c   :  { %p184_p8 = por %p183_p7, %p182_p6 }
  0x2e   :  { %p185_p9 = pnand %p184_p8, %p178_p5 }
  0x30   :  { %188 = shalt.err (!%p185_p9)
}
  0x31   :  { %40 = dma.hbm_to_vmem [thread:$0]  %s291_s2, 128, %s38_s9, [#allocation6]  }
  0x32   :  { %211 = dma.done.wait [#allocation3], 32  }
  0x33   :  { %212 = vsyncadd [#allocation3], 4294967264 }
  0x34   :  { %213 = dma.done.wait [#allocation6], 256  }
  0x35   :  { %214 = vsyncadd [#allocation6], 4294967040  ;;  %v56_v0 = vld [vmem:[#allocation5] sm:$0xff]  ;;  %v50_v1 = vld [vmem:[#allocation2] sm:$0x3]  ;;  %vm82_vm0 = vcmask 57344  }
  0x36   :  { %v59_v2 = vadd.f32 1e-08, %v56_v0  ;;  %v52_v3 = vrot.slane %v50_v1, 7  ;;  %v57_v7 = vld [vmem:[#allocation7] sm:$0xff]  ;;  %vm63_vm1 = vcmask 261120   ;;  %vm67_vm2 = vcmask 7168  }
  0x37   :  { %v58_v9 = vsub.f32 0.0, %v57_v7  ;;  %s220_s19 = smov [#allocation8]   ;;  %vm95_vm3 = vcmask 0  }
  0x38   :  { %121 = vlog2.f32 %v59_v2  ;;  %v54_v4 = vsub.f32 %v50_v1, %v52_v3  ;;  %s103_s20 = sshll.u32 %s220_s19, 4  ;;  %s104_s20 = int_to_ptr.vmem [resolvable:$true] %s103_s20 }
  0x39   :  { %s189_s22 = scalar_lea.vmem %s104_s20, 16  ;;  %s193_s23 = scalar_lea.vmem %s104_s20, 32 }
  0x3a   :  { %v55_v5 = vmul.f32 %v54_v4, %v54_v4  ;;  %p190_p10 = scmp.ne.s32.totalorder %s104_s20, %s189_s22  ;;  %p194_p11 = scmp.lt.s32.totalorder %s104_s20, %s104_s20 }
  0x3b   :  { %p195_p12 = scmp.lt.s32.totalorder %s193_s23, %s189_s22 }
  0x3c   :  { %v80_v6 = vrot.slane %v55_v5, 1 }
  0x3d   :  { %p196_p13 = por %p195_p12, %p194_p11 }
  0x3e   :  { %v83_v8 = vsel %vm82_vm0, %v80_v6, 0.0 }
  0x3f   :  { %84 = vadd.xlane.f32.xlu1 %v83_v8  ;;  %p197_p0 = pnand %p196_p13, %p190_p10 }
  0x42   :  { %v122_v10 = vpop.eup %121 }
  0x43   :  { %v61_v11 = vmul.f32 0.6931472, %v122_v10 }
  0x45   :  { %v62_v12 = vmul.f32 %v61_v11, %v58_v9 }
  0x47   :  { %v64_v13 = vsel %vm63_vm1, %v62_v12, 0.0 }
  0x48   :  { %65 = vadd.xlane.f32.xlu0 %v64_v13 }
  0xcc   :  { %v85_v16 = vpop.xlane.xlu1 %84 }
  0xcd   :  { %v86_v17 = vrot.slane %v85_v16, 4 }
  0xcf   :  { %v87_v18 = vadd.f32 %v86_v17, %v85_v16 }
  0xd1   :  { %v88_v19 = vrot.slane %v87_v18, 2 }
  0xd3   :  { %v89_v23 = vadd.f32 %v88_v19, %v87_v18 }
  0xd5   :  { %v66_v14 = vpop.xlane.xlu0 %65  ;;  %v90_v26 = vrot.slane %v89_v23, 1 }
  0xd6   :  { %v68_v15 = vsel %vm67_vm2, %v66_v14, 0.0 }
  0xd7   :  { %69 = vadd.xlane.f32.xlu0 %v68_v15  ;;  %v91_v29 = vadd.f32 %v90_v26, %v89_v23 }
 0x164   :  { %v70_v20 = vpop.xlane.xlu0 %69 }
 0x165   :  { %v71_v21 = vrot.slane %v70_v20, 4 }
 0x167   :  { %v72_v22 = vadd.f32 %v71_v21, %v70_v20 }
 0x169   :  { %v73_v24 = vrot.slane %v72_v22, 2 }
 0x16b   :  { %v74_v25 = vadd.f32 %v73_v24, %v72_v22 }
 0x16d   :  { %v75_v27 = vrot.slane %v74_v25, 1 }
 0x16f   :  { %v76_v28 = vadd.f32 %v75_v27, %v74_v25 }
 0x171   :  { %113 = vpush %v76_v28 }
 0x172   :  { %115 = vpush %v91_v29 }
 0x1a2   :  { %s114_s2 = spop %113 }
 0x1a3   :  { %v78_v30 = vstv %s114_s2  ;;  %s116_s21 = spop %115 }
 0x1a4   :  { %v93_v31 = vstv %s116_s21 }
 0x1a5   :  { %v94_v32 = vadd.f32 %v93_v31, %v78_v30 }
 0x1a7   :  { %96 = vst.msk [vmem:[#allocation8] sm:$0x1] %vm95_vm3, %v94_v32 }
 0x1a8   :  { %200 = shalt.err (!%p197_p0)
}
 0x1a9   :  { %s201_s26 = scalar_lea.hbm %s292_s3, 16 }
 0x1aa   :  { %p202_p1 = scmp.ne.s32.totalorder %s292_s3, %s201_s26  ;;  %p205_p2 = scmp.lt.u32.totalorder %s201_s26, %s292_s3 }
 0x1ac   :  { %p207_p3 = pnand %p205_p2, %p202_p1 }
 0x1ae   :  { %210 = shalt.err (!%p207_p3)
}
 0x1af   :  { %106 = dma.vmem_to_hbm [thread:$0]  %s104_s20, 16, %s292_s3, [#allocation4]  }
 0x1b0   :  { %215 = dma.done.wait [#allocation4], 16  }
 0x1b1   :  { %216 = vsyncadd [#allocation4], 4294967280 }
 0x1b2   :  { %110 = vsyncpa [#allocation3], 1 }
 0x1b3   :  { %111 = vsyncpa [#allocation6], 1 }
 0x1b4   :  { %112 = vsyncpa [#allocation4], 1 }

</bundles_post_ra>
